<compile_context>
chip_gen: v7x
topology: tpu7x:2x2x1
jax: 0.10.0
libtpu: 0.0.40
codegen_flags: <defaults>
</compile_context>

<pallas_src>
import jax
import jax.numpy as jnp
from jax.experimental import pallas as pl
from jax.experimental.pallas import tpu as pltpu


def _domain_clf_kernel(x_ref, w_ref, b_ref, o_ref):
    # Gradient reversal is identity in the forward pass -> nothing to do here.
    x = x_ref[...].astype(jnp.float32)          # (TB, D), upcast in-kernel
    w = w_ref[...].astype(jnp.float32)          # (8, D), all rows identical
    # Contract over D: (8, D) . (TB, D)^T -> (8, TB).  Logits land on the lane
    # axis, so the store below is lane-dense (no masked 1-lane vst.msk).
    logits = jax.lax.dot_general(
        w, x,
        dimension_numbers=(((1,), (1,)), ((), ())),
        preferred_element_type=jnp.float32,
    )
    row = logits[0:1, :] + b_ref[0]             # (1, TB); bias scalar from SMEM
    o_ref[0] = jax.nn.sigmoid(row).astype(o_ref.dtype)


def _pick_batch_tile(B, D, itemsize, block_b):
    """Batch-tile rows per grid step, sized against the lane-padded footprint."""
    if B <= 256:
        return B  # single small tile (e.g. the toy module shape)
    # Real VMEM cost of one x buffer: TB * round_up(D, 128) * itemsize bytes
    # (lanes pad D -> 128), times 2 for double buffering.  Keep the x
    # double-buffer under ~24 MiB so everything fits the 32 MiB scoped limit
    # requested below (v5e default is only 16 MiB).
    lane_padded_row = max(128, ((D + 127) // 128) * 128) * itemsize
    vmem_cap_rows = (24 * 1024 * 1024) // (2 * lane_padded_row)
    tb = min(block_b, B, vmem_cap_rows)
    tb = max(128, (tb // 128) * 128)            # lane-dense output width
    # Keep >= 2 grid steps so v7x's two TensorCores both get work.
    if tb >= B:
        tb = max(128, ((pl.cdiv(B, 2) + 127) // 128) * 128)
    return tb


def domain_shared_classifier(h_share, weight, bias, *, block_b=16384):
    """h_share: (B, D) f32/bf16, weight: (1, D), bias: (1,) -> (B, 1)."""
    B, D = h_share.shape
    TB = _pick_batch_tile(B, D, h_share.dtype.itemsize, block_b)
    G = pl.cdiv(B, TB)

    # Tiny one-time param prep (does NOT touch the big activation array).
    w_mat = jnp.broadcast_to(weight.reshape(1, D).astype(jnp.float32), (8, D))
    b_vec = bias.reshape((1,)).astype(jnp.float32)

    in_bytes = B * D * h_share.dtype.itemsize
    out3 = pl.pallas_call(
        _domain_clf_kernel,
        out_shape=jax.ShapeDtypeStruct((G, 1, TB), h_share.dtype),
        grid=(G,),
        in_specs=[
            # x: tiled over batch, full feature dim, streamed in native dtype.
            pl.BlockSpec((TB, D), lambda i: (i, 0)),
            # weight: resident across all grid steps.
            pl.BlockSpec((8, D), lambda i: (0, 0)),
            # bias: scalar in SMEM (no padded VMEM tile, no per-step DMA).
            pl.BlockSpec(memory_space=pltpu.SMEM),
        ],
        # Lane-dense output rows: block last-two dims == array last-two dims.
        out_specs=pl.BlockSpec((1, 1, TB), lambda i: (i, 0, 0)),
        compiler_params=pltpu.CompilerParams(
            dimension_semantics=("parallel",),
            vmem_limit_bytes=32 * 1024 * 1024,
        ),
        cost_estimate=pl.CostEstimate(
            flops=2 * B * D,
            transcendentals=B,
            bytes_accessed=in_bytes + B * h_share.dtype.itemsize + 8 * D * 4 + 4,
        ),
    )(h_share, w_mat, b_vec)

    # Undo the lane-dense packing (tiny: B elements) and drop padded rows.
    return out3.reshape(G * TB)[:B].reshape(B, 1)


if __name__ == "__main__":
    key = jax.random.PRNGKey(0)

    def run_check(batch, dim, subkey):
        kx, kw, kb = jax.random.split(subkey, 3)
        h_share = jax.random.normal(kx, (batch, dim), dtype=jnp.float32)
        weight = jax.random.normal(kw, (1, dim), dtype=jnp.float32) * 0.1
        bias = jax.random.normal(kb, (1,), dtype=jnp.float32) * 0.1

        out = jax.block_until_ready(domain_shared_classifier(h_share, weight, bias))
        ref = jax.nn.sigmoid(h_share @ weight.T + bias)
        assert out.shape == (batch, 1)
        # Tolerance leaves headroom for the MXU f32 matmul path.
        assert jnp.allclose(out, ref, atol=2e-3, rtol=2e-3), float(
            jnp.max(jnp.abs(out - ref))
        )

    k1, k2, k3 = jax.random.split(key, 3)
    run_check(8, 32, k1)      # the module's toy shape (single tile)
    run_check(4096, 32, k2)   # tiled path: 2 grid steps, lane-dense (1, 2048) rows
    run_check(777, 32, k3)    # ragged batch: partial last tile sliced off in wrapper

    print("KERNEL_OK")
</pallas_src>

<mosaic_0001>
module attributes {stable_mosaic.version = 11 : i64} {
  func.func @_domain_clf_kernel(%arg0: i32, %arg1: memref<8x32xf32, #tpu.memory_space<vmem>>, %arg2: memref<8x32xf32, #tpu.memory_space<vmem>>, %arg3: memref<1xf32, #tpu.memory_space<smem>>, %arg4: memref<1x1x8xf32, #tpu.memory_space<vmem>>) attributes {dimension_semantics = [#tpu.dimension_semantics<parallel>], iteration_bounds = array<i64: 1>, scalar_prefetch = 0 : i64, scratch_operands = 0 : i64, tpu.core_type = #tpu.core_type<tc>, window_params = [{transform_indices = @transform_0, window_bounds = array<i64: 8, 32>}, {pipeline_mode = #tpu.pipeline_mode<synchronous>, transform_indices = @transform_1, window_bounds = array<i64: 8, 32>}, {transform_indices = @transform_2, window_bounds = array<i64: 1>}, {transform_indices = @transform_3, window_bounds = array<i64: 1, 1, 8>}]} {
    %c0 = arith.constant 0 : index
    %c0_0 = arith.constant 0 : index
    %0 = vector.load %arg1[%c0, %c0_0] : memref<8x32xf32, #tpu.memory_space<vmem>>, vector<8x32xf32>
    %c0_1 = arith.constant 0 : index
    %c0_2 = arith.constant 0 : index
    %1 = vector.load %arg2[%c0_1, %c0_2] : memref<8x32xf32, #tpu.memory_space<vmem>>, vector<8x32xf32>
    %cst = arith.constant dense<0.000000e+00> : vector<8x8xf32>
    %2 = tpu.matmul %1, %0, %cst {dimension_numbers = #tpu.dot_dimension_numbers<[1], [1], [0], [0], [0, 0, 1, 0], [], []>} : vector<8x32xf32>, vector<8x32xf32>, vector<8x8xf32> -> vector<8x8xf32>
    %3 = vector.extract_strided_slice %2 {offsets = [0, 0], sizes = [1, 8], strides = [1, 1]} : vector<8x8xf32> to vector<1x8xf32>
    %c0_3 = arith.constant 0 : index
    %4 = memref.load %arg3[%c0_3] : memref<1xf32, #tpu.memory_space<smem>>
    %5 = vector.broadcast %4 : f32 to vector<1x8xf32>
    %6 = arith.addf %3, %5 : vector<1x8xf32>
    %7 = arith.negf %6 : vector<1x8xf32>
    %8 = math.exp %7 : vector<1x8xf32>
    %cst_4 = arith.constant 1.000000e+00 : f32
    %9 = vector.broadcast %cst_4 : f32 to vector<1x8xf32>
    %10 = arith.addf %9, %8 : vector<1x8xf32>
    %11 = arith.divf %9, %10 : vector<1x8xf32>
    %c0_5 = arith.constant 0 : index
    %c0_6 = arith.constant 0 : index
    %c0_7 = arith.constant 0 : index
    %12 = vector.load %arg4[%c0_5, %c0_6, %c0_7] : memref<1x1x8xf32, #tpu.memory_space<vmem>>, vector<1x1x8xf32>
    %13 = vector.shape_cast %12 : vector<1x1x8xf32> to vector<1x8xf32>
    %14 = vector.shape_cast %11 : vector<1x8xf32> to vector<1x1x8xf32>
    tpu.vector_store %arg4[%c0_5, %c0_6, %c0_7], %14 {strides = array<i32>} : memref<1x1x8xf32, #tpu.memory_space<vmem>>, vector<1x1x8xf32>,
    return
  }
  func.func @transform_0(%arg0: i32) -> (i32, i32) {
    %c0_i32 = arith.constant 0 : i32
    %c0_i32_0 = arith.constant 0 : i32
    return %arg0, %c0_i32 : i32, i32
  }
  func.func @transform_1(%arg0: i32) -> (i32, i32) {
    %c0_i32 = arith.constant 0 : i32
    %c0_i32_0 = arith.constant 0 : i32
    %c0_i32_1 = arith.constant 0 : i32
    return %c0_i32, %c0_i32_0 : i32, i32
  }
  func.func @transform_2(%arg0: i32) -> i32 {
    %c0_i32 = arith.constant 0 : i32
    %c0_i32_0 = arith.constant 0 : i32
    return %c0_i32 : i32
  }
  func.func @transform_3(%arg0: i32) -> (i32, i32, i32) {
    %c0_i32 = arith.constant 0 : i32
    %c0_i32_0 = arith.constant 0 : i32
    %c0_i32_1 = arith.constant 0 : i32
    return %arg0, %c0_i32, %c0_i32_0 : i32, i32, i32
  }
}

</mosaic_0001>

<bundles_post_ra>
// kernel: tpu_custom_call.1
= control target key start
LH: loop header
LB: loop body
LE: loop exit
PB: predicated region body
PF: predicated region fallthrough
CT: control target
= control target key end

     0   :  { %9 = vsyncpa [#allocation4], 0  ;;  %s301_s0 = inlined_call_operand.hbm [shape: f32[8,32], index: 0, kind: input, shape index: {}]   ;;  %s302_s1 = inlined_call_operand.hbm [shape: f32[8,32], index: 1, kind: input, shape index: {}]   ;;  %s303_s2 = inlined_call_operand.<no memory space> [shape: f32[1], index: 2, kind: input, shape index: {}]   ;;  %s304_s3 = inlined_call_operand.hbm [shape: f32[1,1,8], index: 3, kind: output, shape index: {}]  }
   0x1   :  { %10 = vsyncpa [#allocation7], 0 }
   0x2   :  { %11 = vsyncpa [#allocation5], 0  ;;  %s237_s12 = smov [#allocation3]   ;;  %s238_s14 = smov [#allocation6]  }
   0x3   :  { %s18_s13 = sshll.u32 %s237_s12, 4  ;;  %s28_s15 = sshll.u32 %s238_s14, 4  ;;  %s19_s13 = int_to_ptr.vmem [resolvable:$true] %s18_s13  ;;  %s29_s15 = int_to_ptr.vmem [resolvable:$true] %s28_s15 }
   0x4   :  { %s165_s18 = scalar_lea.hbm %s301_s0, 128 }
   0x5   :  { %p166_p0 = scmp.ne.s32.totalorder %s301_s0, %s165_s18  ;;  %p169_p1 = scmp.lt.u32.totalorder %s165_s18, %s301_s0 }
   0x7   :  { %p171_p2 = pnand %p169_p1, %p166_p0 }
   0x9   :  { %174 = shalt.err (!%p171_p2)
}
   0xa   :  { %s175_s23 = scalar_lea.vmem %s19_s13, 128  ;;  %p180_p4 = scmp.lt.s32.totalorder %s19_s13, %s19_s13 }
   0xb   :  { %p176_p3 = scmp.ne.s32.totalorder %s19_s13, %s175_s23  ;;  %p181_p5 = scmp.lt.s32.totalorder %s175_s23, %s175_s23 }
   0xd   :  { %p182_p6 = por %p181_p5, %p180_p4 }
   0xf   :  { %p183_p7 = pnand %p182_p6, %p176_p3 }
  0x11   :  { %186 = shalt.err (!%p183_p7)
}
  0x12   :  { %21 = dma.hbm_to_vmem [thread:$0]  %s301_s0, 128, %s19_s13, [#allocation4]  }
  0x13   :  { %s187_s28 = scalar_lea.hbm %s302_s1, 128 }
  0x14   :  { %p188_p8 = scmp.ne.s32.totalorder %s302_s1, %s187_s28  ;;  %p191_p9 = scmp.lt.u32.totalorder %s187_s28, %s302_s1 }
  0x16   :  { %p193_p10 = pnand %p191_p9, %p188_p8 }
  0x18   :  { %196 = shalt.err (!%p193_p10)
}
  0x19   :  { %s197_s6 = scalar_lea.vmem %s29_s15, 128  ;;  %p202_p12 = scmp.lt.s32.totalorder %s29_s15, %s29_s15 }
  0x1a   :  { %p198_p11 = scmp.ne.s32.totalorder %s29_s15, %s197_s6  ;;  %p203_p13 = scmp.lt.s32.totalorder %s197_s6, %s197_s6 }
  0x1c   :  { %p204_p0 = por %p203_p13, %p202_p12 }
  0x1e   :  { %p205_p1 = pnand %p204_p0, %p198_p11 }
  0x20   :  { %208 = shalt.err (!%p205_p1)
}
  0x21   :  { %31 = dma.hbm_to_vmem [thread:$0]  %s302_s1, 128, %s29_s15, [#allocation7]  }
  0x22   :  { %231 = dma.done.wait [#allocation4], 128  }
  0x23   :  { %232 = vsyncadd [#allocation4], 4294967168 }
  0x24   :  { %233 = dma.done.wait [#allocation7], 128  }
  0x25   :  { %234 = vsyncadd [#allocation7], 4294967168  ;;  %v239_v0 = vmov 0.0   ;;  %vm240_vm0 = vmmov 0   ;;  %vm42_vm1 = vcmask 261120   ;;  %v40_v1 = vld [vmem:[#allocation3] sm:$0xff]  ;;  %v120_v3 = vstv %s303_s2 }
  0x26   :  { %151 = vmatprep.subr.mxu0 %v239_v0  ;;  %153 = vmatprep.mubr.msk.f32.mxu0 %vm240_vm0, %v239_v0  ;;  %v41_v2 = vld [vmem:[#allocation6] sm:$0xff]  ;;  %s241_s1 = smov [#allocation8]   ;;  %vm128_vm2 = vcmask 57344  }
  0x27   :  { %152 = vmatpush3.xpose.msk.msra.mxu0 %vm42_vm1, %v40_v1  ;;  %s136_s10 = sshll.u32 %s241_s1, 4  ;;  %s137_s10 = int_to_ptr.vmem [resolvable:$true] %s136_s10 }
  0x28   :  { %s209_s11 = scalar_lea.vmem %s137_s10, 16  ;;  %s213_s12 = scalar_lea.vmem %s137_s10, 32 }
  0x29   :  { %p210_p2 = scmp.ne.s32.totalorder %s137_s10, %s209_s11  ;;  %p214_p3 = scmp.lt.s32.totalorder %s137_s10, %s137_s10 }
  0x2a   :  { %154 = vmatmul.mubr.msk.f32.vlgmr.msra.gmra.mrb[0].mxu0 %vm42_vm1, %v41_v2  ;;  %p215_p4 = scmp.lt.s32.totalorder %s213_s12, %s209_s11 }
  0x2c   :  { %p216_p5 = por %p215_p4, %p214_p3 }
  0x2e   :  { %p217_p6 = pnand %p216_p5, %p210_p2 }
  0xfd   :  { %v115_v4 = vpop.f32.mrb[0].mxu0 }
  0xfe   :  { %v121_v5 = vadd.f32 %v120_v3, %v115_v4  ;;  %v155_v6 = vpop.f32.mrb[1].mxu0 }
 0x100   :  { %v148_v7 = vmul.f32 -1.442695, %v121_v5 }
 0x102   :  { %161 = vpow2.f32 %v148_v7 }
 0x10c   :  { %v162_v8 = vpop.eup %161 }
 0x10d   :  { %v125_v9 = vadd.f32 1.0, %v162_v8 }
 0x10f   :  { %163 = vrcp.f32 %v125_v9 }
 0x119   :  { %v164_v10 = vpop.eup %163 }
 0x11a   :  { %129 = vst.msk [vmem:[#allocation8] sm:$0x1] %vm128_vm2, %v164_v10 }
 0x11b   :  { %220 = shalt.err (!%p217_p6)
}
 0x11c   :  { %s221_s14 = scalar_lea.hbm %s304_s3, 16 }
 0x11d   :  { %p222_p7 = scmp.ne.s32.totalorder %s304_s3, %s221_s14  ;;  %p225_p8 = scmp.lt.u32.totalorder %s221_s14, %s304_s3 }
 0x11f   :  { %p227_p9 = pnand %p225_p8, %p222_p7 }
 0x121   :  { %230 = shalt.err (!%p227_p9)
}
 0x122   :  { %139 = dma.vmem_to_hbm [thread:$0]  %s137_s10, 16, %s304_s3, [#allocation5]  }
 0x123   :  { %235 = dma.done.wait [#allocation5], 16  }
 0x124   :  { %236 = vsyncadd [#allocation5], 4294967280 }
 0x125   :  { %143 = vsyncpa [#allocation4], 1 }
 0x126   :  { %144 = vsyncpa [#allocation7], 1 }
 0x127   :  { %145 = vsyncpa [#allocation5], 1 }

</bundles_post_ra>
